<compile_context>
chip_gen: v7x
topology: tpu7x:2x2x1
jax: 0.10.0
libtpu: 0.0.40
codegen_flags: <defaults>
</compile_context>

<pallas_src>
import functools

import jax
import jax.numpy as jnp
from jax import lax
from jax.experimental import pallas as pl
from jax.experimental.pallas import tpu as pltpu

_EPS = 1e-12  # matches torch.nn.functional.normalize default eps


def _l2_contrastive_kernel(f1_ref, f2_ref, out_ref,
                           f1n_ref, nsq1_ref, acc_ref, *rest,
                           margin, max_violation):
    rowmax_ref = rest[0] if max_violation else None

    i = pl.program_id(0)            # scores row block (parallel across cores)
    j = pl.program_id(1)            # scores col block (sequential inner sweep)
    nj = pl.num_programs(1)

    # ---- once per row block (j == 0): normalize the resident f1 tile, cache
    #      it (bf16 MXU operand + f32 squared norm of the normalized rows,
    #      which is 1 for regular rows and 0 for all-zero rows), and reset the
    #      per-row-block accumulators.
    @pl.when(j == 0)
    def _():
        f1 = f1_ref[...].astype(jnp.float32)
        sq1 = jnp.sum(f1 * f1, axis=1, keepdims=True)               # (T, 1)
        inv1 = lax.rsqrt(jnp.maximum(sq1, _EPS * _EPS))             # 1 / max(||x||, eps)
        f1n_ref[...] = (f1 * inv1).astype(f1n_ref.dtype)
        nsq1_ref[...] = sq1 * (inv1 * inv1)
        acc_ref[0, 0] = 0.0
        if max_violation:
            rowmax_ref[...] = jnp.zeros_like(rowmax_ref)             # cost >= 0

    # ---- per step: fold the f2 col-block normalization into lane-major (1, T)
    #      scale factors (ones-row MXU matvec), so there is no (T,1)->(1,T)
    #      relayout and no (T, D) rescale of f2 on the hot path.
    f2 = f2_ref[...].astype(jnp.float32)                             # (T, D)
    ones_row = jnp.ones((1, f2.shape[1]), jnp.float32)
    sq2_row = lax.dot_general(ones_row, f2 * f2, (((1,), (1,)), ((), ())),
                              preferred_element_type=jnp.float32)    # (1, T)
    inv2_row = lax.rsqrt(jnp.maximum(sq2_row, _EPS * _EPS))          # (1, T)
    nsq2_row = sq2_row * (inv2_row * inv2_row)                       # 1 (or 0)

    # ---- pairwise squared L2 distances: one bf16 MXU gram (f32 accumulation)
    #      plus a cheap lane-broadcast scale to apply f2's normalization.
    gram = lax.dot_general(f1n_ref[...], f2.astype(jnp.bfloat16),
                           (((1,), (1,)), ((), ())),
                           preferred_element_type=jnp.float32)       # (T, T)
    d2 = jnp.maximum(nsq1_ref[...] + nsq2_row - gram * (2.0 * inv2_row), 0.0)
    cost = jnp.maximum(margin - jnp.sqrt(d2), 0.0)                   # (T, T)
    t = cost.shape[0]

    def _diag_terms():
        # Exact f32 path for the global diagonal (runs only on diagonal blocks):
        # direct difference -> no bf16 rounding, no catastrophic cancellation.
        f1 = f1_ref[...].astype(jnp.float32)
        f2f = f2_ref[...].astype(jnp.float32)
        sq1 = jnp.sum(f1 * f1, axis=1, keepdims=True)
        sq2 = jnp.sum(f2f * f2f, axis=1, keepdims=True)
        diff = (f1 * lax.rsqrt(jnp.maximum(sq1, _EPS * _EPS))
                - f2f * lax.rsqrt(jnp.maximum(sq2, _EPS * _EPS)))
        diag_d2 = jnp.sum(diff * diff, axis=1, keepdims=True)        # (T, 1)
        eye = (lax.broadcasted_iota(jnp.int32, (t, t), 0) ==
               lax.broadcasted_iota(jnp.int32, (t, t), 1))
        return diag_d2, jnp.where(eye, 0.0, cost)

    if max_violation:
        @pl.when(i == j)
        def _():
            diag_d2, cost_off = _diag_terms()
            acc_ref[0, 0] += jnp.sum(diag_d2)
            rowmax_ref[...] = jnp.maximum(
                rowmax_ref[...], jnp.max(cost_off, axis=1, keepdims=True))

        @pl.when(i != j)
        def _():
            rowmax_ref[...] = jnp.maximum(
                rowmax_ref[...], jnp.max(cost, axis=1, keepdims=True))
    else:
        @pl.when(i == j)
        def _():
            diag_d2, cost_off = _diag_terms()
            acc_ref[0, 0] += jnp.sum(diag_d2) + jnp.sum(cost_off * cost_off)

        @pl.when(i != j)
        def _():
            acc_ref[0, 0] += jnp.sum(cost * cost)

    # ---- per-row-block finalize: emit this block's partial sum as a
    #      lane-dense (8, 128) slab (unmasked store); wrapper sums/divides.
    @pl.when(j == nj - 1)
    def _():
        total = acc_ref[0, 0]
        if max_violation:
            rm = rowmax_ref[...]
            total = total + jnp.sum(rm * rm)
        out_ref[...] = jnp.broadcast_to(total, out_ref.shape)


def _vmem_capacity_bytes():
    try:
        cap = getattr(pltpu.get_tpu_info(), "vmem_capacity_bytes", None)
        if cap:
            return int(cap)
    except Exception:
        pass
    return 64 * 2 ** 20          # v7x per-core VMEM: most restrictive generation


def _pick_tile(b, d, itemsize, vmem_bytes):
    """Largest lane-dense tile that divides B and fits the VMEM budget."""
    def est(t):
        return (2 * 2 * t * d * itemsize     # double-buffered f1 / f2 tiles
                + t * d * 2                  # bf16 f1n cache
                + 2 * t * d * 4              # f32 copy of f2 + its square
                + 6 * t * t * 4              # gram / d2 / cost / mask temporaries
                + 16 * t * 4)                # (T,1)/(1,T) vectors
    divisors = [t for t in (512, 256, 128) if b % t == 0]
    for t in divisors:
        if est(t) <= int(0.55 * vmem_bytes):
            return t, est(t)
    if divisors:                             # nothing "fits": smallest lane-dense tile
        return divisors[-1], est(divisors[-1])
    # TODO(synk): pad B up to a multiple of 128 and mask the padded rows/cols
    # instead of this single-block fallback for batch sizes not divisible by 128.
    # TODO(synk): for very large D, add a K grid axis over D with a (T, T) f32
    # gram accumulator in VMEM scratch.
    return b, est(b)


def l2_contrastive_loss(feature1, feature2, *, margin=1.0, max_violation=False):
    """Pallas TPU implementation of L2ContrastiveLoss.forward. Inputs: (B, D)."""
    assert feature1.shape == feature2.shape and feature1.ndim == 2
    b, d = feature1.shape
    itemsize = jnp.dtype(feature1.dtype).itemsize
    vmem_cap = _vmem_capacity_bytes()
    t, vmem_est = _pick_tile(b, d, itemsize, vmem_cap)
    ni = b // t
    grid = (ni, ni)

    kernel = functools.partial(_l2_contrastive_kernel,
                               margin=float(margin), max_violation=max_violation)

    scratch = [
        pltpu.VMEM((t, d), jnp.bfloat16),   # cached normalized f1 row block (MXU operand)
        pltpu.VMEM((t, 1), jnp.float32),    # cached ||f1n_row||^2 (1, or 0 for zero rows)
        pltpu.SMEM((1, 1), jnp.float32),    # per-row-block scalar accumulator
    ]
    if max_violation:
        scratch.append(pltpu.VMEM((t, 1), jnp.float32))   # per-row running hinge max

    vmem_limit = int(min(max(2 * vmem_est, 32 * 2 ** 20), int(0.9 * vmem_cap)))

    cost_est = pl.CostEstimate(
        flops=int(2 * b * b * d + 8 * b * b + 8 * b * d),
        transcendentals=int(b * b + 4 * b),
        bytes_accessed=int(b * d * itemsize * (1 + ni) + ni * 8 * 128 * 4),
    )

    # TODO(synk): optionally store the features as bf16 in HBM to halve the
    # re-streamed f2 bytes on v5e (changes input rounding slightly).
    partials = pl.pallas_call(
        kernel,
        out_shape=jax.ShapeDtypeStruct((ni, 8, 128), jnp.float32),
        grid_spec=pltpu.PrefetchScalarGridSpec(
            num_scalar_prefetch=0,
            grid=grid,
            in_specs=[
                pl.BlockSpec((t, d), lambda i, j: (i, 0)),   # f1 row block (resident over j)
                pl.BlockSpec((t, d), lambda i, j: (j, 0)),   # f2 col block (streamed)
            ],
            out_specs=pl.BlockSpec((1, 8, 128), lambda i, j: (i, 0, 0)),
            scratch_shapes=scratch,
        ),
        compiler_params=pltpu.CompilerParams(
            dimension_semantics=("parallel", "arbitrary"),
            vmem_limit_bytes=vmem_limit),
        cost_estimate=cost_est,
    )(feature1, feature2)

    return jnp.sum(partials[:, 0, 0]) / (2.0 * b)


def _reference(feature1, feature2, *, margin=1.0, max_violation=False):
    """Pure-JAX reference mirroring the PyTorch forward exactly."""
    f1 = feature1 / jnp.maximum(
        jnp.linalg.norm(feature1, axis=1, keepdims=True), 1e-12)
    f2 = feature2 / jnp.maximum(
        jnp.linalg.norm(feature2, axis=1, keepdims=True), 1e-12)
    diff = f1[:, None, :] - f2[None, :, :]
    scores = jnp.sqrt(jnp.sum(diff * diff, axis=2))
    diag = jnp.diagonal(scores)
    cost = jnp.clip(margin - scores, 0.0, None)
    eye = jnp.eye(scores.shape[0]) > 0.5
    cost = jnp.where(eye, 0.0, cost)
    if max_violation:
        cost = jnp.max(cost, axis=1)
    bsz = feature1.shape[0]
    return (jnp.sum(cost ** 2) + jnp.sum(diag ** 2)) / (2.0 * bsz)


if __name__ == "__main__":
    key = jax.random.PRNGKey(0)
    k1, k2, k3, k4 = jax.random.split(key, 4)

    # Tolerance note: the off-diagonal gram runs with bf16 MXU operands (f32
    # accumulation); the diagonal term stays in exact f32, so the loss matches
    # the f32 reference well inside 1e-3.
    RTOL = ATOL = 1e-3

    # Small (batch, hidden) shape consistent with the module's feature inputs.
    B, D = 8, 32
    feature1 = jax.random.normal(k1, (B, D), dtype=jnp.float32)
    feature2 = jax.random.normal(k2, (B, D), dtype=jnp.float32)
    for margin in (1.0, 1.5):
        for mv in (False, True):
            loss = jax.block_until_ready(
                l2_contrastive_loss(feature1, feature2, margin=margin,
                                    max_violation=mv))
            ref = _reference(feature1, feature2, margin=margin, max_violation=mv)
            assert jnp.allclose(loss, ref, rtol=RTOL, atol=ATOL), (margin, mv, loss, ref)

    # Larger batches exercising the tiled grid: single-block (256) and a 3x3
    # grid (384) with cached row-block normalization, diagonal vs off-diagonal
    # branches, and per-row-block partial outputs.
    for (B2, D2, mv) in ((256, 128, False), (384, 64, True)):
        g1 = jax.random.normal(k3, (B2, D2), dtype=jnp.float32)
        g2 = jax.random.normal(k4, (B2, D2), dtype=jnp.float32)
        loss2 = jax.block_until_ready(
            l2_contrastive_loss(g1, g2, margin=1.0, max_violation=mv))
        ref2 = _reference(g1, g2, margin=1.0, max_violation=mv)
        assert jnp.allclose(loss2, ref2, rtol=RTOL, atol=ATOL), (B2, D2, mv, loss2, ref2)

    print("KERNEL_OK")
</pallas_src>

<mosaic_0001>
module attributes {stable_mosaic.version = 11 : i64} {
  func.func @_l2_contrastive_kernel(%arg0: i32, %arg1: i32, %arg2: memref<8x32xf32, #tpu.memory_space<vmem>>, %arg3: memref<8x32xf32, #tpu.memory_space<vmem>>, %arg4: memref<1x8x128xf32, #tpu.memory_space<vmem>>, %arg5: memref<8x32xbf16, #tpu.memory_space<vmem>>, %arg6: memref<8x1xf32, #tpu.memory_space<vmem>>, %arg7: memref<1x1xf32, #tpu.memory_space<smem>>) attributes {dimension_semantics = [#tpu.dimension_semantics<parallel>, #tpu.dimension_semantics<arbitrary>], iteration_bounds = array<i64: 1, 1>, scalar_prefetch = 0 : i64, scratch_operands = 3 : i64, tpu.core_type = #tpu.core_type<tc>, window_params = [{transform_indices = @transform_0, window_bounds = array<i64: 8, 32>}, {transform_indices = @transform_1, window_bounds = array<i64: 8, 32>}, {transform_indices = @transform_2, window_bounds = array<i64: 1, 8, 128>}]} {
    %c0_i32 = arith.constant 0 : i32
    %0 = arith.cmpi eq, %arg1, %c0_i32 : i32
    %1 = arith.extui %0 : i1 to i32
    %c0_i32_0 = arith.constant 0 : i32
    %2 = arith.cmpi ne, %1, %c0_i32_0 : i32
    scf.if %2 {
      %c0_17 = arith.constant 0 : index
      %c0_18 = arith.constant 0 : index
      %40 = vector.load %arg2[%c0_17, %c0_18] : memref<8x32xf32, #tpu.memory_space<vmem>>, vector<8x32xf32>
      %41 = arith.mulf %40, %40 : vector<8x32xf32>
      %cst_19 = arith.constant dense<0.000000e+00> : vector<8xf32>
      %42 = vector.multi_reduction <add>, %41, %cst_19 [1] : vector<8x32xf32> to vector<8xf32>
      %43 = vector.shape_cast %42 : vector<8xf32> to vector<8x1xf32>
      %cst_20 = arith.constant 1.000000e-24 : f32
      %44 = vector.broadcast %cst_20 : f32 to vector<8x1xf32>
      %45 = arith.maximumf %43, %44 : vector<8x1xf32>
      %46 = math.rsqrt %45 : vector<8x1xf32>
      %47 = vector.broadcast %46 : vector<8x1xf32> to vector<8x32xf32>
      %48 = arith.mulf %40, %47 : vector<8x32xf32>
      %49 = arith.truncf %48 : vector<8x32xf32> to vector<8x32xbf16>
      %c0_21 = arith.constant 0 : index
      %c0_22 = arith.constant 0 : index
      %50 = vector.load %arg5[%c0_21, %c0_22] : memref<8x32xbf16, #tpu.memory_space<vmem>>, vector<8x32xbf16>
      tpu.vector_store %arg5[%c0_21, %c0_22], %49 {strides = array<i32>} : memref<8x32xbf16, #tpu.memory_space<vmem>>, vector<8x32xbf16>,
      %51 = arith.mulf %46, %46 : vector<8x1xf32>
      %52 = arith.mulf %43, %51 : vector<8x1xf32>
      %c0_23 = arith.constant 0 : index
      %c0_24 = arith.constant 0 : index
      %53 = vector.load %arg6[%c0_23, %c0_24] : memref<8x1xf32, #tpu.memory_space<vmem>>, vector<8x1xf32>
      tpu.vector_store %arg6[%c0_23, %c0_24], %52 {strides = array<i32>} : memref<8x1xf32, #tpu.memory_space<vmem>>, vector<8x1xf32>,
      %cst_25 = arith.constant 0.000000e+00 : f32
      %c0_26 = arith.constant 0 : index
      %c0_27 = arith.constant 0 : index
      %54 = memref.load %arg7[%c0_26, %c0_27] : memref<1x1xf32, #tpu.memory_space<smem>>
      memref.store %cst_25, %arg7[%c0_26, %c0_27] : memref<1x1xf32, #tpu.memory_space<smem>>
    } else {
    }
    %c0 = arith.constant 0 : index
    %c0_1 = arith.constant 0 : index
    %3 = vector.load %arg3[%c0, %c0_1] : memref<8x32xf32, #tpu.memory_space<vmem>>, vector<8x32xf32>
    %cst = arith.constant 1.000000e+00 : f32
    %4 = vector.broadcast %cst : f32 to vector<1x32xf32>
    %5 = arith.mulf %3, %3 : vector<8x32xf32>
    %cst_2 = arith.constant dense<0.000000e+00> : vector<1x8xf32>
    %6 = tpu.matmul %4, %5, %cst_2 {dimension_numbers = #tpu.dot_dimension_numbers<[1], [1], [0], [0], [0, 0, 1, 0], [], []>} : vector<1x32xf32>, vector<8x32xf32>, vector<1x8xf32> -> vector<1x8xf32>
    %cst_3 = arith.constant 1.000000e-24 : f32
    %7 = vector.broadcast %cst_3 : f32 to vector<1x8xf32>
    %8 = arith.maximumf %6, %7 : vector<1x8xf32>
    %9 = math.rsqrt %8 : vector<1x8xf32>
    %10 = arith.mulf %9, %9 : vector<1x8xf32>
    %11 = arith.mulf %6, %10 : vector<1x8xf32>
    %c0_4 = arith.constant 0 : index
    %c0_5 = arith.constant 0 : index
    %12 = vector.load %arg5[%c0_4, %c0_5] : memref<8x32xbf16, #tpu.memory_space<vmem>>, vector<8x32xbf16>
    %13 = arith.truncf %3 : vector<8x32xf32> to vector<8x32xbf16>
    %cst_6 = arith.constant dense<0.000000e+00> : vector<8x8xf32>
    %14 = tpu.matmul %12, %13, %cst_6 {dimension_numbers = #tpu.dot_dimension_numbers<[1], [1], [0], [0], [0, 0, 1, 0], [], []>} : vector<8x32xbf16>, vector<8x32xbf16>, vector<8x8xf32> -> vector<8x8xf32>
    %c0_7 = arith.constant 0 : index
    %c0_8 = arith.constant 0 : index
    %15 = vector.load %arg6[%c0_7, %c0_8] : memref<8x1xf32, #tpu.memory_space<vmem>>, vector<8x1xf32>
    %16 = vector.broadcast %15 : vector<8x1xf32> to vector<8x8xf32>
    %17 = vector.broadcast %11 : vector<1x8xf32> to vector<8x8xf32>
    %18 = arith.addf %16, %17 : vector<8x8xf32>
    %cst_9 = arith.constant 2.000000e+00 : f32
    %19 = vector.broadcast %cst_9 : f32 to vector<1x8xf32>
    %20 = arith.mulf %19, %9 : vector<1x8xf32>
    %21 = vector.broadcast %20 : vector<1x8xf32> to vector<8x8xf32>
    %22 = arith.mulf %14, %21 : vector<8x8xf32>
    %23 = arith.subf %18, %22 : vector<8x8xf32>
    %cst_10 = arith.constant 0.000000e+00 : f32
    %24 = vector.broadcast %cst_10 : f32 to vector<8x8xf32>
    %25 = arith.maximumf %23, %24 : vector<8x8xf32>
    %26 = math.sqrt %25 : vector<8x8xf32>
    %cst_11 = arith.constant 1.000000e+00 : f32
    %27 = vector.broadcast %cst_11 : f32 to vector<8x8xf32>
    %28 = arith.subf %27, %26 : vector<8x8xf32>
    %cst_12 = arith.constant 0.000000e+00 : f32
    %29 = vector.broadcast %cst_12 : f32 to vector<8x8xf32>
    %30 = arith.maximumf %28, %29 : vector<8x8xf32>
    %31 = arith.cmpi eq, %arg0, %arg1 : i32
    %32 = arith.extui %31 : i1 to i32
    %c0_i32_13 = arith.constant 0 : i32
    %33 = arith.cmpi ne, %32, %c0_i32_13 : i32
    scf.if %33 {
      %c0_17 = arith.constant 0 : index
      %c0_18 = arith.constant 0 : index
      %40 = vector.load %arg2[%c0_17, %c0_18] : memref<8x32xf32, #tpu.memory_space<vmem>>, vector<8x32xf32>
      %c0_19 = arith.constant 0 : index
      %c0_20 = arith.constant 0 : index
      %41 = vector.load %arg3[%c0_19, %c0_20] : memref<8x32xf32, #tpu.memory_space<vmem>>, vector<8x32xf32>
      %42 = arith.mulf %40, %40 : vector<8x32xf32>
      %cst_21 = arith.constant dense<0.000000e+00> : vector<8xf32>
      %43 = vector.multi_reduction <add>, %42, %cst_21 [1] : vector<8x32xf32> to vector<8xf32>
      %44 = vector.shape_cast %43 : vector<8xf32> to vector<8x1xf32>
      %45 = arith.mulf %41, %41 : vector<8x32xf32>
      %cst_22 = arith.constant dense<0.000000e+00> : vector<8xf32>
      %46 = vector.multi_reduction <add>, %45, %cst_22 [1] : vector<8x32xf32> to vector<8xf32>
      %47 = vector.shape_cast %46 : vector<8xf32> to vector<8x1xf32>
      %cst_23 = arith.constant 1.000000e-24 : f32
      %48 = vector.broadcast %cst_23 : f32 to vector<8x1xf32>
      %49 = arith.maximumf %44, %48 : vector<8x1xf32>
      %50 = math.rsqrt %49 : vector<8x1xf32>
      %51 = vector.broadcast %50 : vector<8x1xf32> to vector<8x32xf32>
      %52 = arith.mulf %40, %51 : vector<8x32xf32>
      %cst_24 = arith.constant 1.000000e-24 : f32
      %53 = vector.broadcast %cst_24 : f32 to vector<8x1xf32>
      %54 = arith.maximumf %47, %53 : vector<8x1xf32>
      %55 = math.rsqrt %54 : vector<8x1xf32>
      %56 = vector.broadcast %55 : vector<8x1xf32> to vector<8x32xf32>
      %57 = arith.mulf %41, %56 : vector<8x32xf32>
      %58 = arith.subf %52, %57 : vector<8x32xf32>
      %59 = arith.mulf %58, %58 : vector<8x32xf32>
      %cst_25 = arith.constant dense<0.000000e+00> : vector<8xf32>
      %60 = vector.multi_reduction <add>, %59, %cst_25 [1] : vector<8x32xf32> to vector<8xf32>
      %61 = vector.shape_cast %60 : vector<8xf32> to vector<8x1xf32>
      %62 = tpu.iota {dimensions = array<i32: 0>} : vector<8x8xi32>
      %63 = tpu.iota {dimensions = array<i32: 1>} : vector<8x8xi32>
      %64 = arith.cmpi eq, %62, %63 : vector<8x8xi32>
      %cst_26 = arith.constant 0.000000e+00 : f32
      %65 = vector.broadcast %cst_26 : f32 to vector<8x8xf32>
      %66 = arith.select %64, %65, %30 : vector<8x8xi1>, vector<8x8xf32>
      %c0_27 = arith.constant 0 : index
      %c0_28 = arith.constant 0 : index
      %67 = memref.load %arg7[%c0_27, %c0_28] : memref<1x1xf32, #tpu.memory_space<smem>>
      %68 = vector.shape_cast %61 : vector<8x1xf32> to vector<1x8x1xf32>
      %cst_29 = arith.constant dense<0.000000e+00> : vector<1xf32>
      %69 = vector.multi_reduction <add>, %68, %cst_29 [1, 2] : vector<1x8x1xf32> to vector<1xf32>
      %70 = vector.shape_cast %69 : vector<1xf32> to vector<1x1x1xf32>
      %71 = vector.extract %70[0, 0, 0] : f32 from vector<1x1x1xf32>
      %72 = arith.mulf %66, %66 : vector<8x8xf32>
      %73 = vector.shape_cast %72 : vector<8x8xf32> to vector<1x8x8xf32>
      %cst_30 = arith.constant dense<0.000000e+00> : vector<1xf32>
      %74 = vector.multi_reduction <add>, %73, %cst_30 [1, 2] : vector<1x8x8xf32> to vector<1xf32>
      %75 = vector.shape_cast %74 : vector<1xf32> to vector<1x1x1xf32>
      %76 = vector.extract %75[0, 0, 0] : f32 from vector<1x1x1xf32>
      %77 = arith.addf %71, %76 : f32
      %78 = arith.addf %67, %77 : f32
      %c0_31 = arith.constant 0 : index
      %c0_32 = arith.constant 0 : index
      %79 = memref.load %arg7[%c0_31, %c0_32] : memref<1x1xf32, #tpu.memory_space<smem>>
      memref.store %78, %arg7[%c0_31, %c0_32] : memref<1x1xf32, #tpu.memory_space<smem>>
    } else {
    }
    %34 = arith.cmpi ne, %arg0, %arg1 : i32
    %35 = arith.extui %34 : i1 to i32
    %c0_i32_14 = arith.constant 0 : i32
    %36 = arith.cmpi ne, %35, %c0_i32_14 : i32
    scf.if %36 {
      %c0_17 = arith.constant 0 : index
      %c0_18 = arith.constant 0 : index
      %40 = memref.load %arg7[%c0_17, %c0_18] : memref<1x1xf32, #tpu.memory_space<smem>>
      %41 = arith.mulf %30, %30 : vector<8x8xf32>
      %42 = vector.shape_cast %41 : vector<8x8xf32> to vector<1x8x8xf32>
      %cst_19 = arith.constant dense<0.000000e+00> : vector<1xf32>
      %43 = vector.multi_reduction <add>, %42, %cst_19 [1, 2] : vector<1x8x8xf32> to vector<1xf32>
      %44 = vector.shape_cast %43 : vector<1xf32> to vector<1x1x1xf32>
      %45 = vector.extract %44[0, 0, 0] : f32 from vector<1x1x1xf32>
      %46 = arith.addf %40, %45 : f32
      %c0_20 = arith.constant 0 : index
      %c0_21 = arith.constant 0 : index
      %47 = memref.load %arg7[%c0_20, %c0_21] : memref<1x1xf32, #tpu.memory_space<smem>>
      memref.store %46, %arg7[%c0_20, %c0_21] : memref<1x1xf32, #tpu.memory_space<smem>>
    } else {
    }
    %c0_i32_15 = arith.constant 0 : i32
    %37 = arith.cmpi eq, %arg1, %c0_i32_15 : i32
    %38 = arith.extui %37 : i1 to i32
    %c0_i32_16 = arith.constant 0 : i32
    %39 = arith.cmpi ne, %38, %c0_i32_16 : i32
    scf.if %39 {
      %c0_17 = arith.constant 0 : index
      %c0_18 = arith.constant 0 : index
      %40 = memref.load %arg7[%c0_17, %c0_18] : memref<1x1xf32, #tpu.memory_space<smem>>
      %41 = vector.broadcast %40 : f32 to vector<1x8x128xf32>
      %c0_19 = arith.constant 0 : index
      %c0_20 = arith.constant 0 : index
      %c0_21 = arith.constant 0 : index
      %42 = vector.load %arg4[%c0_19, %c0_20, %c0_21] : memref<1x8x128xf32, #tpu.memory_space<vmem>>, vector<1x8x128xf32>
      tpu.vector_store %arg4[%c0_19, %c0_20, %c0_21], %41 {strides = array<i32>} : memref<1x8x128xf32, #tpu.memory_space<vmem>>, vector<1x8x128xf32>,
    } else {
    }
    return
  }
  func.func @transform_0(%arg0: i32, %arg1: i32) -> (i32, i32) {
    %c0_i32 = arith.constant 0 : i32
    %c0_i32_0 = arith.constant 0 : i32
    return %arg0, %c0_i32 : i32, i32
  }
  func.func @transform_1(%arg0: i32, %arg1: i32) -> (i32, i32) {
    %c0_i32 = arith.constant 0 : i32
    %c0_i32_0 = arith.constant 0 : i32
    return %arg1, %c0_i32 : i32, i32
  }
  func.func @transform_2(%arg0: i32, %arg1: i32) -> (i32, i32, i32) {
    %c0_i32 = arith.constant 0 : i32
    %c0_i32_0 = arith.constant 0 : i32
    %c0_i32_1 = arith.constant 0 : i32
    return %arg0, %c0_i32, %c0_i32_0 : i32, i32, i32
  }
}

</mosaic_0001>

<bundles_post_ra>
// kernel: tpu_custom_call.1
= control target key start
LH: loop header
LB: loop body
LE: loop exit
PB: predicated region body
PF: predicated region fallthrough
CT: control target
= control target key end

     0   :  { %7 = vsyncpa [#allocation6], 0  ;;  %s499_s0 = inlined_call_operand.hbm [shape: f32[8,32], index: 0, kind: input, shape index: {}]   ;;  %s500_s1 = inlined_call_operand.hbm [shape: f32[8,32], index: 1, kind: input, shape index: {}]   ;;  %s501_s2 = inlined_call_operand.hbm [shape: f32[1,8,128], index: 2, kind: output, shape index: {}]  }
   0x1   :  { %8 = vsyncpa [#allocation9], 0 }
   0x2   :  { %9 = vsyncpa [#allocation7], 0  ;;  %s432_s9 = smov [#allocation5]   ;;  %s433_s11 = smov [#allocation8]  }
   0x3   :  { %s16_s10 = sshll.u32 %s432_s9, 4  ;;  %s26_s12 = sshll.u32 %s433_s11, 4  ;;  %s17_s10 = int_to_ptr.vmem [resolvable:$true] %s16_s10  ;;  %s27_s12 = int_to_ptr.vmem [resolvable:$true] %s26_s12 }
   0x4   :  { %s360_s15 = scalar_lea.hbm %s499_s0, 128 }
   0x5   :  { %p361_p0 = scmp.ne.s32.totalorder %s499_s0, %s360_s15  ;;  %p364_p1 = scmp.lt.u32.totalorder %s360_s15, %s499_s0 }
   0x7   :  { %p366_p2 = pnand %p364_p1, %p361_p0 }
   0x9   :  { %369 = shalt.err (!%p366_p2)
}
   0xa   :  { %s370_s20 = scalar_lea.vmem %s17_s10, 128  ;;  %p375_p4 = scmp.lt.s32.totalorder %s17_s10, %s17_s10 }
   0xb   :  { %p371_p3 = scmp.ne.s32.totalorder %s17_s10, %s370_s20  ;;  %p376_p5 = scmp.lt.s32.totalorder %s370_s20, %s370_s20 }
   0xd   :  { %p377_p6 = por %p376_p5, %p375_p4 }
   0xf   :  { %p378_p7 = pnand %p377_p6, %p371_p3 }
  0x11   :  { %381 = shalt.err (!%p378_p7)
}
  0x12   :  { %19 = dma.hbm_to_vmem [thread:$0]  %s499_s0, 128, %s17_s10, [#allocation6]  }
  0x13   :  { %s382_s25 = scalar_lea.hbm %s500_s1, 128 }
  0x14   :  { %p383_p8 = scmp.ne.s32.totalorder %s500_s1, %s382_s25  ;;  %p386_p9 = scmp.lt.u32.totalorder %s382_s25, %s500_s1 }
  0x16   :  { %p388_p10 = pnand %p386_p9, %p383_p8 }
  0x18   :  { %391 = shalt.err (!%p388_p10)
}
  0x19   :  { %s392_s30 = scalar_lea.vmem %s27_s12, 128  ;;  %p397_p12 = scmp.lt.s32.totalorder %s27_s12, %s27_s12 }
  0x1a   :  { %p393_p11 = scmp.ne.s32.totalorder %s27_s12, %s392_s30  ;;  %p398_p13 = scmp.lt.s32.totalorder %s392_s30, %s392_s30 }
  0x1c   :  { %p399_p0 = por %p398_p13, %p397_p12 }
  0x1e   :  { %p400_p1 = pnand %p399_p0, %p393_p11 }
  0x20   :  { %403 = shalt.err (!%p400_p1)
}
  0x21   :  { %29 = dma.hbm_to_vmem [thread:$0]  %s500_s1, 128, %s27_s12, [#allocation9]  }
  0x22   :  { %426 = dma.done.wait [#allocation6], 128  }
  0x23   :  { %427 = vsyncadd [#allocation6], 4294967168 }
  0x24   :  { %428 = dma.done.wait [#allocation9], 128  }
  0x25   :  { %429 = vsyncadd [#allocation9], 4294967168  ;;  %v434_v0 = vmov 0.0   ;;  %vm435_vm0 = vmmov 0   ;;  %v41_v1 = vld [vmem:[#allocation5] sm:$0xff]  ;;  %vm43_vm1 = vcmask 261120   ;;  %v196_v36 = vlaneseq }
  0x26   :  { %326 = vmatprep.subr.mxu0 %v434_v0  ;;  %328 = vmatprep.mubr.msk.f32.mxu0 %vm435_vm0, %v434_v0  ;;  %v59_v2 = vld [vmem:[#allocation8] sm:$0xff]  ;;  %v42_v3 = vmul.f32 %v41_v1, %v41_v1  ;;  %v436_v7 = vmov 1.0   ;;  %v437_v10 = vmov 0   ;;  %vm51_vm2 = vcmask 257024   ;;  %s438_s4 = smov [#allocation10]  }
  0x27   :  { %331 = vmatprep.subr.bf16.mxu1 %v434_v0  ;;  %333 = vmatprep.mubr.msk.bf16.mxu1 %vm435_vm0, %v434_v0  ;;  %v60_v4 = vmul.f32 %v59_v2, %v59_v2  ;;  %v143_v8 = vpack.c.bf16 %v59_v2, %v59_v2  ;;  %vm55_vm3 = vcmask 7168   ;;  %v197_v39 = vshrl.u32 %v196_v36, 7  ;;  %s309_s5 = sshll.u32 %s438_s4, 4  ;;  %s310_s5 = int_to_ptr.vmem [resolvable:$true] %s309_s5 }
  0x28   :  { %v44_v5 = vsel %vm43_vm1, %v42_v3, 0.0  ;;  %348 = vset.pattern.permute.xlu1 %v437_v10  ;;  %349 = vset.pattern.permute.xlu0 %v437_v10  ;;  %v246_v57 = vand.u32 127, %v196_v36  ;;  %vm262_vm7 = vcmask 64512   ;;  %s404_s8 = scalar_lea.vmem %s310_s5, 128  ;;  %p409_p3 = scmp.lt.s32.totalorder %s310_s5, %s310_s5 }
  0x29   :  { %327 = vmatpush3.xpose.msk.msra.mxu0 %vm43_vm1, %v60_v4  ;;  %v229_v6 = vsel %vm43_vm1, %v60_v4, 0.0  ;;  %45 = vadd.xlane.f32.xlu0 %v44_v5  ;;  %v148_v9 = vsel %vm43_vm1, %v143_v8, 0  ;;  %v198_v41 = vsub.s32 0, %v197_v39  ;;  %p405_p2 = scmp.ne.s32.totalorder %s310_s5, %s404_s8  ;;  %p410_p4 = scmp.lt.s32.totalorder %s404_s8, %s404_s8 }
  0x2a   :  { %230 = vadd.xlane.f32.xlu1 %v229_v6  ;;  %332 = vmatpush3.bf16.xpose.msra.mxu1 %v148_v9  ;;  %vm247_vm6 = vcmp.eq.s32.totalorder %v197_v39, %v246_v57 }
  0x2b   :  { %p411_p5 = por %p410_p4, %p409_p3 }
  0x2c   :  { %329 = vmatmul.mubr.msk.f32.vlgmr.msra.gmra.mrb[0].mxu0 %vm43_vm1, %v436_v7 }
  0x2d   :  { %226 = vadd.xlane.f32.xlu0 %v44_v5  ;;  %p412_p6 = pnand %p411_p5, %p405_p2 }
  0xb6   :  { %v46_v11 = vpop.xlane.xlu0 %45 }
  0xb7   :  { %v231_v12 = vpop.xlane.xlu1 %230  ;;  %v47_v13 = vmax.f32 %v46_v11, 1e-24 }
  0xb8   :  { %v235_v14 = vmax.f32 %v231_v12, 1e-24 }
  0xb9   :  { %350 = vrsqrt.f32 %v47_v13 }
  0xba   :  { %352 = vrsqrt.f32 %v235_v14  ;;  %v227_v15 = vpop.xlane.xlu0 %226 }
  0xbb   :  { %v232_v16 = vmax.f32 %v227_v15, 1e-24 }
  0xbd   :  { %354 = vrsqrt.f32 %v232_v16 }
  0xc3   :  { %v351_v17 = vpop.eup %350 }
  0xc4   :  { %v353_v18 = vpop.eup %352  ;;  %v49_v19 = vmul.f32 %v351_v17, %v41_v1  ;;  %v53_v20 = vmul.f32 %v351_v17, %v351_v17 }
  0xc5   :  { %v237_v23 = vmul.f32 %v353_v18, %v59_v2 }
  0xc6   :  { %v50_v21 = vpack.c.bf16 %v49_v19, %v49_v19  ;;  %v54_v22 = vmul.f32 %v53_v20, %v46_v11 }
  0xc7   :  { %v355_v24 = vpop.eup %354 }
  0xc8   :  { %52 = vst.msk [vmem:[#allocation2] sm:$0xf] %vm51_vm2, %v50_v21  ;;  %v234_v25 = vmul.f32 %v355_v24, %v41_v1 }
  0xc9   :  { %56 = vst.msk [vmem:[#allocation3] sm:$0xff] %vm55_vm3, %v54_v22 }
  0xca   :  { %v238_v26 = vsub.f32 %v234_v25, %v237_v23 }
  0xcc   :  { %v239_v27 = vmul.f32 %v238_v26, %v238_v26 }
  0xce   :  { %v240_v28 = vsel %vm43_vm1, %v239_v27, 0.0 }
  0xcf   :  { %v142_v30 = vld [vmem:[#allocation2] sm:$0xf]  ;;  %241 = vadd.xlane.f32.xlu0 %v240_v28 }
  0xd0   :  { %v190_v29 = vld [vmem:[#allocation3] sm:$0xff]  ;;  %334 = vmatmul.mubr.msk.bf16.vlgmr.msra.gmra.mrb[0].mxu1 %vm43_vm1, %v142_v30 }
  0xd1   :  { %193 = vperm.xlu1 %348, %v190_v29  }
  0xff   :  { %v134_v31 = vpop.f32.mrb[0].mxu0 }
 0x100   :  { %v330_v32 = vpop.f32.mrb[1].mxu0  ;;  %v138_v35 = vmax.f32 %v134_v31, 1e-24 }
 0x102   :  { %356 = vrsqrt.f32 %v138_v35 }
 0x10c   :  { %v357_v37 = vpop.eup %356 }
 0x10d   :  { %v140_v38 = vmul.f32 %v357_v37, %v357_v37  ;;  %v201_v42 = vmul.f32 2.0, %v357_v37 }
 0x10f   :  { %v141_v40 = vmul.f32 %v140_v38, %v134_v31  ;;  %v205_v45 = vrot.slane %v201_v42, %v198_v41 }
 0x111   :  { %v199_v43 = vrot.slane %v141_v40, %v198_v41 }
 0x150   :  { %v194_v44 = vpop.permute.xlu1 %193 }
 0x151   :  { %v200_v47 = vadd.f32 %v199_v43, %v194_v44 }
 0x15c   :  { %v242_v33 = vpop.xlane.xlu0 %241 }
 0x15d   :  { %v251_v34 = vsel %vm55_vm3, %v242_v33, 0.0 }
 0x15e   :  { %252 = vadd.xlane.f32.xlu0 %v251_v34 }
 0x1a3   :  { %v184_v46 = vpop.f32.mrb[0].mxu1 }
 0x1a4   :  { %v206_v48 = vmul.f32 %v205_v45, %v184_v46  ;;  %v335_v49 = vpop.f32.mrb[1].mxu1 }
 0x1a5   :  { %v187_v50 = vpop.f32.mrb[2].mxu1 }
 0x1a6   :  { %v207_v51 = vsub.f32 %v200_v47, %v206_v48  ;;  %v336_v52 = vpop.f32.mrb[3].mxu1 }
 0x1a8   :  { %v208_v53 = vmax.f32 %v207_v51, 0.0 }
 0x1aa   :  { %358 = vrsqrt.f32 %v208_v53  ;;  %vm211_vm4 = vcmp.eq.f32.partialorder %v208_v53, inf  ;;  %v214_v56 = vand.u32 2147483648, %v208_v53  ;;  %vm213_vm5 = vcmp.eq.f32.partialorder %v208_v53, 0.0 }
 0x1b4   :  { %v359_v54 = vpop.eup %358 }
 0x1b5   :  { %v210_v55 = vmul.f32 %v359_v54, %v208_v53 }
 0x1b7   :  { %v212_v58 = vsel %vm211_vm4, %v208_v53, %v210_v55 }
 0x1b8   :  { %v215_v59 = vsel %vm213_vm5, %v214_v56, %v212_v58 }
 0x1b9   :  { %v216_v60 = vsub.f32 1.0, %v215_v59 }
 0x1bb   :  { %v217_v61 = vmax.f32 %v216_v60, 0.0 }
 0x1bd   :  { %v248_v62 = vsel %vm247_vm6, 0.0, %v217_v61 }
 0x1be   :  { %v261_v63 = vmul.f32 %v248_v62, %v248_v62 }
 0x1c0   :  { %v263_v0 = vsel %vm262_vm7, %v261_v63, 0.0 }
 0x1c1   :  { %264 = vadd.xlane.f32.xlu0 %v263_v0 }
 0x1eb   :  { %v253_v1 = vpop.xlane.xlu0 %252 }
 0x1ec   :  { %v254_v2 = vrot.slane %v253_v1, 4 }
 0x1ee   :  { %v255_v3 = vadd.f32 %v254_v2, %v253_v1 }
 0x1f0   :  { %v256_v4 = vrot.slane %v255_v3, 2 }
 0x1f2   :  { %v257_v5 = vadd.f32 %v256_v4, %v255_v3 }
 0x1f4   :  { %v258_v6 = vrot.slane %v257_v5, 1 }
 0x1f6   :  { %v259_v7 = vadd.f32 %v258_v6, %v257_v5 }
 0x1f8   :  { %337 = vpush %v259_v7 }
 0x229   :  { %s338_s1 = spop %337 }
 0x24e   :  { %v265_v8 = vpop.xlane.xlu0 %264 }
 0x24f   :  { %v266_v9 = vrot.slane %v265_v8, 4 }
 0x251   :  { %v267_v10 = vadd.f32 %v266_v9, %v265_v8 }
 0x253   :  { %v268_v11 = vrot.slane %v267_v10, 2 }
 0x255   :  { %v269_v12 = vadd.f32 %v268_v11, %v267_v10 }
 0x257   :  { %v270_v13 = vrot.slane %v269_v12, 1 }
 0x259   :  { %v271_v14 = vadd.f32 %v270_v13, %v269_v12 }
 0x25b   :  { %339 = vpush %v271_v14 }
 0x28c   :  { %s340_s6 = spop %339 }
 0x28d   :  { %s273_s7 = sadd.f32 %s340_s6, %s338_s1 }
 0x28f   :  { %v301_v15 = vstv %s273_s7 }
 0x290   :  { %302 = vst [vmem:[#allocation10] sm:$0xff] %v301_v15 }
 0x291   :  { %415 = shalt.err (!%p412_p6)
}
 0x292   :  { %s416_s11 = scalar_lea.hbm %s501_s2, 128 }
 0x293   :  { %p417_p7 = scmp.ne.s32.totalorder %s501_s2, %s416_s11  ;;  %p420_p8 = scmp.lt.u32.totalorder %s416_s11, %s501_s2 }
 0x295   :  { %p422_p9 = pnand %p420_p8, %p417_p7 }
 0x297   :  { %425 = shalt.err (!%p422_p9)
}
 0x298   :  { %312 = dma.vmem_to_hbm [thread:$0]  %s310_s5, 128, %s501_s2, [#allocation7]  }
 0x299   :  { %430 = dma.done.wait [#allocation7], 128  }
 0x29a   :  { %431 = vsyncadd [#allocation7], 4294967168 }
 0x29b   :  { %316 = vsyncpa [#allocation6], 1 }
 0x29c   :  { %317 = vsyncpa [#allocation9], 1 }
 0x29d   :  { %318 = vsyncpa [#allocation7], 1 }

</bundles_post_ra>
